<compile_context>
chip_gen: v6e
topology: v6e:2x2x1
jax: 0.10.0
libtpu: 0.0.40
codegen_flags: <defaults>
</compile_context>

<pallas_src>
import numpy as np
import jax
import jax.numpy as jnp
from jax.experimental import pallas as pl
from jax.experimental.pallas import tpu as pltpu

LOG_2PI = float(np.log(2.0 * np.pi))


# ----------------------------------------------------------------------------
# Per-generation VMEM plan: (per-block byte budget, scoped vmem limit).
# ----------------------------------------------------------------------------
def _vmem_plan():
    vmem = 0
    try:
        info = pltpu.get_tpu_info()
        vmem = int(getattr(info, "vmem_capacity_bytes", 0) or 0)
    except Exception:
        vmem = 0
    if vmem >= 128 * 1024 * 1024:
        # v5e / v6e: 128 MiB physical VMEM -> big blocks, raised scoped limit.
        return 6 * 1024 * 1024, 64 * 1024 * 1024
    # v7x (64 MiB physical) or unknown: stay inside a 32 MiB scoped limit.
    return 3 * 1024 * 1024, 32 * 1024 * 1024


def _pick_tb(Bp, cap=256):
    """Batch-block size: prefer an even 2-way split, cap tb for large B."""
    if Bp % 2 == 0 and Bp // 2 <= cap:
        return max(Bp // 2, 1)
    if Bp <= cap:
        return Bp
    for t in range(cap, 0, -1):
        if Bp % t == 0:
            return t
    return 1


# ----------------------------------------------------------------------------
# Main path: D % 128 == 0, sublane-packed (Bp, n_rows, 128) layout.
# Kernel emits per-(pseudo-)sample sum of squares.
# ----------------------------------------------------------------------------
def _make_sumsq_kernel_3d(n_rows, rows_tile, need_mask):
    def kernel(z_ref, out_ref, acc_ref):
        j = pl.program_id(1)
        nj = pl.num_programs(1)

        @pl.when(j == 0)
        def _():
            acc_ref[...] = jnp.zeros_like(acc_ref)

        zt = z_ref[...].astype(jnp.float32)          # (tb, rows_tile, 128)

        if need_mask:
            # Only the final row tile can be partial: keep iota/cmp/select
            # off the hot accumulation path.
            @pl.when(j < nj - 1)
            def _():
                acc_ref[...] += jnp.sum(zt * zt, axis=1)

            @pl.when(j == nj - 1)
            def _():
                row = (j * rows_tile
                       + jax.lax.broadcasted_iota(jnp.int32, zt.shape, 1))
                zm = jnp.where(row < n_rows, zt, 0.0)
                acc_ref[...] += jnp.sum(zm * zm, axis=1)
        else:
            acc_ref[...] += jnp.sum(zt * zt, axis=1)

        @pl.when(j == nj - 1)
        def _():
            # Single cross-lane (XLU) reduce per output block.
            out_ref[0] = jnp.sum(acc_ref[...], axis=-1, keepdims=True)

    return kernel


def _sumsq_3d(z2d, B, D, split):
    Bp = B * split
    Dp = D // split
    n_rows = Dp // 128
    itemsize = int(jnp.dtype(z2d.dtype).itemsize)
    budget, vmem_limit = _vmem_plan()

    tb = _pick_tb(Bp)
    nb = Bp // tb

    z3 = jnp.reshape(z2d, (Bp, n_rows, 128))         # free contiguous view

    # Row tile from the VMEM budget, measured in the *storage* dtype.
    rows_target = max((budget // (tb * 128 * itemsize)) // 8 * 8, 8)
    if n_rows <= rows_target:
        rows_tile, need_mask = n_rows, False
    else:
        rows_tile, need_mask = rows_target, True
        # Prefer a divisor of n_rows (no tail tile -> no mask at all).
        for d in range(rows_target, rows_target // 2, -1):
            if d % 8 == 0 and n_rows % d == 0:
                rows_tile, need_mask = d, False
                break
    grid_d = pl.cdiv(n_rows, rows_tile)

    kernel = _make_sumsq_kernel_3d(n_rows, rows_tile, need_mask)

    out = pl.pallas_call(
        kernel,
        out_shape=jax.ShapeDtypeStruct((nb, tb, 1), jnp.float32),
        grid_spec=pltpu.PrefetchScalarGridSpec(
            num_scalar_prefetch=0,
            grid=(nb, grid_d),
            in_specs=[pl.BlockSpec((tb, rows_tile, 128),
                                   lambda i, j: (i, j, 0))],
            out_specs=pl.BlockSpec((1, tb, 1), lambda i, j: (i, 0, 0)),
            scratch_shapes=[pltpu.VMEM((tb, 128), jnp.float32)],
        ),
        compiler_params=pltpu.CompilerParams(
            dimension_semantics=("parallel", "arbitrary"),
            vmem_limit_bytes=vmem_limit,
        ),
        cost_estimate=pl.CostEstimate(
            flops=2 * Bp * n_rows * 128,
            transcendentals=0,
            bytes_accessed=Bp * n_rows * 128 * itemsize + Bp * 4,
        ),
    )(z3)
    return jnp.reshape(out, (Bp,))


# ----------------------------------------------------------------------------
# Fallback path: D % 128 != 0 -> (B, D) layout, tail-only column masking,
# parallel batch axis.
# ----------------------------------------------------------------------------
def _make_sumsq_kernel_2d(true_d, col_tile, need_mask):
    def kernel(z_ref, out_ref, acc_ref):
        j = pl.program_id(1)
        nj = pl.num_programs(1)

        @pl.when(j == 0)
        def _():
            acc_ref[...] = jnp.zeros_like(acc_ref)

        zt = z_ref[...].astype(jnp.float32)          # (tb, col_tile)

        if need_mask:
            @pl.when(j < nj - 1)
            def _():
                acc_ref[...] += jnp.sum(zt * zt, axis=-1, keepdims=True)

            @pl.when(j == nj - 1)
            def _():
                col = (j * col_tile
                       + jax.lax.broadcasted_iota(jnp.int32, zt.shape, 1))
                zm = jnp.where(col < true_d, zt, 0.0)
                acc_ref[...] += jnp.sum(zm * zm, axis=-1, keepdims=True)
        else:
            acc_ref[...] += jnp.sum(zt * zt, axis=-1, keepdims=True)

        @pl.when(j == nj - 1)
        def _():
            out_ref[0] = acc_ref[...]

    return kernel


def _pick_tb_2d(B, cap=512):
    if B <= cap:
        return B                 # block dim equals full array dim -> legal
    for t in range(cap - cap % 8, 7, -8):     # multiple of 8 dividing B
        if B % t == 0:
            return t
    return B


def _sumsq_2d(z2d, B, D):
    itemsize = int(jnp.dtype(z2d.dtype).itemsize)
    budget, vmem_limit = _vmem_plan()

    tb = _pick_tb_2d(B)
    nb = B // tb

    col_target = max((budget // (tb * itemsize)) // 128 * 128, 128)
    if D <= col_target:
        col_tile, need_mask = D, False
    else:
        col_tile, need_mask = col_target, (D % col_target != 0)
    grid_c = pl.cdiv(D, col_tile)

    kernel = _make_sumsq_kernel_2d(D, col_tile, need_mask)

    out = pl.pallas_call(
        kernel,
        out_shape=jax.ShapeDtypeStruct((nb, tb, 1), jnp.float32),
        grid_spec=pltpu.PrefetchScalarGridSpec(
            num_scalar_prefetch=0,
            grid=(nb, grid_c),
            in_specs=[pl.BlockSpec((tb, col_tile), lambda i, j: (i, j))],
            out_specs=pl.BlockSpec((1, tb, 1), lambda i, j: (i, 0, 0)),
            scratch_shapes=[pltpu.VMEM((tb, 1), jnp.float32)],
        ),
        compiler_params=pltpu.CompilerParams(
            dimension_semantics=("parallel", "arbitrary"),
            vmem_limit_bytes=vmem_limit,
        ),
        cost_estimate=pl.CostEstimate(
            flops=2 * B * D,
            transcendentals=0,
            bytes_accessed=B * D * itemsize + B * 4,
        ),
    )(z2d)
    return jnp.reshape(out, (B,))


# ----------------------------------------------------------------------------
# Public wrapper.
# ----------------------------------------------------------------------------
def real_nvp_loss(z, sldj, k=256):
    """z: (B, C, H, W) (any float dtype), sldj: (B,) -> scalar nll."""
    B = int(z.shape[0])
    D = int(np.prod(z.shape[1:]))
    const_term = -(0.5 * LOG_2PI + float(np.log(k))) * float(D)

    z2d = jnp.reshape(z, (B, D))          # free view; native dtype kept in HBM
    sldj1 = jnp.reshape(sldj, (B,)).astype(jnp.float32)

    if D % 128 == 0:
        # Odd / size-1 batch: split each feature row into two contiguous
        # halves (free reshape) so the parallel batch grid axis has >= 2
        # blocks and both v7x TensorCores get work.
        split = 2 if (B % 2 == 1 and D % 256 == 0 and D >= 2048) else 1
        sumsq_p = _sumsq_3d(z2d, B, D, split)
        if split > 1:
            sumsq = jnp.sum(jnp.reshape(sumsq_p, (B, split)), axis=-1)
        else:
            sumsq = sumsq_p
    else:
        sumsq = _sumsq_2d(z2d, B, D)

    # Tiny O(B) epilogue in plain JAX.
    prior_ll = -0.5 * sumsq + const_term
    ll = prior_ll + sldj1
    return -jnp.mean(ll)


def real_nvp_loss_ref(z, sldj, k=256):
    prior_ll = -0.5 * (z.astype(jnp.float32) ** 2 + LOG_2PI)
    prior_ll = jnp.sum(jnp.reshape(prior_ll, (z.shape[0], -1)), axis=-1)
    prior_ll = prior_ll - np.log(k) * np.prod(z.shape[1:])
    ll = prior_ll + sldj.astype(jnp.float32)
    return -jnp.mean(ll)


if __name__ == "__main__":
    key = jax.random.PRNGKey(0)
    kz, ks = jax.random.split(key)

    # Primary case (NCHW, D = 4*16*16 = 1024, D % 128 == 0 -> main path).
    B, C, H, W = 2, 4, 16, 16
    z = jax.random.normal(kz, (B, C, H, W), dtype=jnp.float32)
    sldj = jax.random.normal(ks, (B,), dtype=jnp.float32)
    nll = jax.block_until_ready(real_nvp_loss(z, sldj, k=256))
    nll_ref = jax.block_until_ready(real_nvp_loss_ref(z, sldj, k=256))
    assert np.allclose(np.asarray(nll), np.asarray(nll_ref),
                       rtol=1e-5, atol=1e-3), f"mismatch (3d): {nll} vs {nll_ref}"

    # Odd batch -> feature-split path (keeps both v7x TensorCores busy).
    z3b = jax.random.normal(kz, (3, 8, 16, 16), dtype=jnp.float32)
    sldj3b = jax.random.normal(ks, (3,), dtype=jnp.float32)
    nll3b = jax.block_until_ready(real_nvp_loss(z3b, sldj3b, k=256))
    nll3b_ref = jax.block_until_ready(real_nvp_loss_ref(z3b, sldj3b, k=256))
    assert np.allclose(np.asarray(nll3b), np.asarray(nll3b_ref),
                       rtol=1e-5, atol=1e-3), f"mismatch (split): {nll3b} vs {nll3b_ref}"

    # bf16 storage dtype (itemsize-aware tiling; f32 math in-kernel).
    z_bf = jax.random.normal(kz, (B, C, H, W), dtype=jnp.float32).astype(jnp.bfloat16)
    nll_bf = jax.block_until_ready(real_nvp_loss(z_bf, sldj, k=256))
    nll_bf_ref = jax.block_until_ready(real_nvp_loss_ref(z_bf, sldj, k=256))
    assert np.allclose(np.asarray(nll_bf), np.asarray(nll_bf_ref),
                       rtol=1e-4, atol=1e-2), f"mismatch (bf16): {nll_bf} vs {nll_bf_ref}"

    # D % 128 != 0 fallback (masked 2D path, batch-parallel).
    z_odd = jax.random.normal(kz, (2, 3, 5, 5), dtype=jnp.float32)
    sldj_odd = jax.random.normal(ks, (2,), dtype=jnp.float32)
    nll_odd = jax.block_until_ready(real_nvp_loss(z_odd, sldj_odd, k=256))
    nll_odd_ref = jax.block_until_ready(real_nvp_loss_ref(z_odd, sldj_odd, k=256))
    assert np.allclose(np.asarray(nll_odd), np.asarray(nll_odd_ref),
                       rtol=1e-5, atol=1e-3), f"mismatch (2d): {nll_odd} vs {nll_odd_ref}"

    print("KERNEL_OK")
</pallas_src>

<mosaic_0001>
module attributes {stable_mosaic.version = 11 : i64} {
  func.func @kernel(%arg0: i32, %arg1: i32, %arg2: memref<1x8x128xf32, #tpu.memory_space<vmem>>, %arg3: memref<1x1x1xf32, #tpu.memory_space<vmem>>, %arg4: memref<1x128xf32, #tpu.memory_space<vmem>>) attributes {dimension_semantics = [#tpu.dimension_semantics<parallel>, #tpu.dimension_semantics<arbitrary>], iteration_bounds = array<i64: 2, 1>, scalar_prefetch = 0 : i64, scratch_operands = 1 : i64, tpu.core_type = #tpu.core_type<tc>, window_params = [{transform_indices = @transform_0, window_bounds = array<i64: 1, 8, 128>}, {transform_indices = @transform_1, window_bounds = array<i64: 1, 1, 1>}]} {
    %c0_i32 = arith.constant 0 : i32
    %0 = arith.cmpi eq, %arg1, %c0_i32 : i32
    %1 = arith.extui %0 : i1 to i32
    %c0_i32_0 = arith.constant 0 : i32
    %2 = arith.cmpi ne, %1, %c0_i32_0 : i32
    scf.if %2 {
      %cst_9 = arith.constant 0.000000e+00 : f32
      %12 = vector.broadcast %cst_9 : f32 to vector<1x128xf32>
      %c0_10 = arith.constant 0 : index
      %c0_11 = arith.constant 0 : index
      %13 = vector.load %arg4[%c0_10, %c0_11] : memref<1x128xf32, #tpu.memory_space<vmem>>, vector<1x128xf32>
      tpu.vector_store %arg4[%c0_10, %c0_11], %12 {strides = array<i32>} : memref<1x128xf32, #tpu.memory_space<vmem>>, vector<1x128xf32>,
    } else {
    }
    %c0 = arith.constant 0 : index
    %c0_1 = arith.constant 0 : index
    %c0_2 = arith.constant 0 : index
    %3 = vector.load %arg2[%c0, %c0_1, %c0_2] : memref<1x8x128xf32, #tpu.memory_space<vmem>>, vector<1x8x128xf32>
    %c0_3 = arith.constant 0 : index
    %c0_4 = arith.constant 0 : index
    %4 = vector.load %arg4[%c0_3, %c0_4] : memref<1x128xf32, #tpu.memory_space<vmem>>, vector<1x128xf32>
    %5 = arith.mulf %3, %3 : vector<1x8x128xf32>
    %cst = arith.constant dense<0.000000e+00> : vector<1x128xf32>
    %6 = vector.multi_reduction <add>, %5, %cst [1] : vector<1x8x128xf32> to vector<1x128xf32>
    %7 = arith.addf %4, %6 : vector<1x128xf32>
    %c0_5 = arith.constant 0 : index
    %c0_6 = arith.constant 0 : index
    %8 = vector.load %arg4[%c0_5, %c0_6] : memref<1x128xf32, #tpu.memory_space<vmem>>, vector<1x128xf32>
    tpu.vector_store %arg4[%c0_5, %c0_6], %7 {strides = array<i32>} : memref<1x128xf32, #tpu.memory_space<vmem>>, vector<1x128xf32>,
    %c0_i32_7 = arith.constant 0 : i32
    %9 = arith.cmpi eq, %arg1, %c0_i32_7 : i32
    %10 = arith.extui %9 : i1 to i32
    %c0_i32_8 = arith.constant 0 : i32
    %11 = arith.cmpi ne, %10, %c0_i32_8 : i32
    scf.if %11 {
      %c0_9 = arith.constant 0 : index
      %c0_10 = arith.constant 0 : index
      %12 = vector.load %arg4[%c0_9, %c0_10] : memref<1x128xf32, #tpu.memory_space<vmem>>, vector<1x128xf32>
      %cst_11 = arith.constant dense<0.000000e+00> : vector<1xf32>
      %13 = vector.multi_reduction <add>, %12, %cst_11 [1] : vector<1x128xf32> to vector<1xf32>
      %14 = vector.shape_cast %13 : vector<1xf32> to vector<1x1xf32>
      %c0_12 = arith.constant 0 : index
      %c0_13 = arith.constant 0 : index
      %c0_14 = arith.constant 0 : index
      %15 = vector.load %arg3[%c0_12, %c0_13, %c0_14] : memref<1x1x1xf32, #tpu.memory_space<vmem>>, vector<1x1x1xf32>
      %16 = vector.shape_cast %15 : vector<1x1x1xf32> to vector<1x1xf32>
      %17 = vector.shape_cast %14 : vector<1x1xf32> to vector<1x1x1xf32>
      tpu.vector_store %arg3[%c0_12, %c0_13, %c0_14], %17 {strides = array<i32>} : memref<1x1x1xf32, #tpu.memory_space<vmem>>, vector<1x1x1xf32>,
    } else {
    }
    return
  }
  func.func @transform_0(%arg0: i32, %arg1: i32) -> (i32, i32, i32) {
    %c0_i32 = arith.constant 0 : i32
    %c0_i32_0 = arith.constant 0 : i32
    return %arg0, %arg1, %c0_i32 : i32, i32, i32
  }
  func.func @transform_1(%arg0: i32, %arg1: i32) -> (i32, i32, i32) {
    %c0_i32 = arith.constant 0 : i32
    %c0_i32_0 = arith.constant 0 : i32
    %c0_i32_1 = arith.constant 0 : i32
    return %arg0, %c0_i32, %c0_i32_0 : i32, i32, i32
  }
}

</mosaic_0001>

<bundles_post_ra>
// kernel: tpu_custom_call.1
= control target key start
LH: loop header
LB: loop body
LE: loop exit
PB: predicated region body
PF: predicated region fallthrough
CT: control target
= control target key end

     0   :  { %6 = vsyncpa [#allocation4], 0  ;;  %s497_s0 = inlined_call_operand.hbm [shape: f32[2,8,128], index: 0, kind: input, shape index: {}]   ;;  %s498_s1 = inlined_call_operand.vmem [shape: f32[2,1,1], index: 1, kind: output, shape index: {}]  }
   0x1   :  { %8 = vsyncpa [#allocation4 + $0x1], 0  ;;  %s397_s6 = smov 0   ;;  %s399_s7 = smov 0  }
   0x2   :  { %s401_s8 = smov 0   ;;  %s403_s9 = smov 0  }
   0x3   :  { %s405_s10 = smov 0   ;;  %s407_s11 = smov 0  }
   0x4 LB: > { %s239_s12 = sadd.s32 4294967295, %s383_s11   ;;  %s26_s13 = sadd.s32 1, %s379_s10  ;;  %s383_s11 = sphi %s407_s11, %s14_s11   ;;  %s379_s10 = sphi %s405_s10, %s506_s10   ;;  %s375_s9 = sphi %s403_s9, %s505_s9   ;;  %s371_s8 = sphi %s401_s8, %s504_s8   ;;  %s367_s7 = sphi %s399_s7, %s503_s7   ;;  %s363_s6 = sphi %s397_s6, %s502_s6  }
   0x5   : > { %p28_p0 = scmp.ge.s32.totalorder %s26_s13, 2  ;;  %s35_s14 = sadd.s32 1, %s371_s8 }
   0x6   : > { %p42_p1 = scmp.ne.s32.totalorder %s371_s8, %s367_s7  ;;  %p43_p2 = scmp.eq.s32.totalorder %s383_s11, 0 }
   0x7   : > { %s508_s13 = smov (%p28_p0, %s26_s13), 0  ;;  %p48_p4 = scmp.ne.s32.totalorder %s367_s7, %s363_s6 }
   0x8   : > { %p433_p3 = por %p43_p2, %p42_p1  ;;  %s30_s16 = ssub.s32 %s379_s10, %s508_s13 }
   0x9   : > { %p49_p5 = scmp.eq.s32.totalorder %s239_s12, 0  ;;  %p33_p6 = scmp.eq.s32.totalorder %s30_s16, 0 }
   0xa   : > { %p255_p8 = scmp.lt.s32.totalorder %s383_s11, 2  ;;  %s98_s19 = sand.u32 1, %s371_s8  }
   0xb   : > { %p440_p7 = por %p49_p5, %p48_p4  ;;  %s244_s20 = sshll.u32 %s379_s10, 7 }
   0xc   : > { %s446_s18 = scalar_select %p33_p6, %s371_s8, %s35_s14  }
   0xd   : > { %s243_s21 = sshll.u32 %s98_s19, 3  ;;  %s108_s24 = scalar_lea.hbm %s497_s0, %s244_s20 }
   0xe   : > { %s102_s25 = scalar_lea.vmem [#allocation3], %s243_s21  ;;  %p455_p9 = pnand %p255_p8, %p433_p3 }
   0xf   : > { %s110_s26 = sshll.u32 %s102_s25, 4  ;;  %p245_p10 = scmp.ge.s32.totalorder %s383_s11, 1  ;;  %s111_s26 = int_to_ptr.vmem [resolvable:$true] %s110_s26 }
  0x10   : > { %p115_p11 = scmp.lt.s32.totalorder %s383_s11, 3  ;;  %s99_s28 = scalar_lea.sflag [#allocation4], %s98_s19 }
  0x11   : > { %p307_p12 = pneg %p455_p9  ;;  %s318_s29 = scalar_lea.vmem %s111_s26, 128 }
  0x12   : > { %p319_p13 = scmp.ne.s32.totalorder %s111_s26, %s318_s29  ;;  %s385_s30 = smov [#allocation3]  }
  0x13   : > { %s323_s2 = sshll.u32 %s385_s30, 4  ;;  %s324_s2 = int_to_ptr.vmem [resolvable:$false] %s323_s2 }
  0x14   : > { %p321_p0 = pnand %p319_p13, %p307_p12  ;;  %s325_s3 = scalar_lea.vmem %s324_s2, 256 }
  0x15   : > { %p326_p2 = scmp.lt.s32.totalorder %s111_s26, %s324_s2  ;;  %p327_p3 = scmp.lt.s32.totalorder %s325_s3, %s318_s29 }
  0x16   : > { %p322_p1 = pneg %p321_p0 }
  0x17   : > { %p328_p4 = por %p327_p3, %p326_p2 }
  0x19   : > { %p329_p5 = pnand %p328_p4, %p322_p1 }
  0x1b   : > { %332 = shalt.err (!%p329_p5)
}
  0x1c   : > { %254 = dma.hbm_to_vmem [thread:$0]  (!%p455_p9), %s108_s24, 128, %s111_s26, %s99_s28  }
  0x1d   : > { %p116_p6 = pnand %p245_p10, %p115_p11 }
  0x1e   : > { %s121_s4 = sand.u32 (!%p116_p6), 1, %s367_s7  }
  0x1f   : > { %119 = sbr.rel (%p116_p6) target bundleno = 202 (0xca), region = 24  ;;  %s246_s5 = sshll.u32 (!%p116_p6), %s121_s4, 3 }
  0x20   : > { %s122_s6 = scalar_lea.sflag (!%p116_p6), [#allocation4], %s121_s4  ;;  %s125_s12 = scalar_lea.vmem (!%p116_p6), [#allocation3], %s246_s5 }
  0x24   : > { %358 = dma.done.wait (%p440_p7), %s122_s6, 128  }
  0x25   : > { %360 = vsyncadd (%p440_p7), %s122_s6, 4294967168  ;;  %v386_v0 = vmov 0.0   ;;  %v150_v1 = vld [vmem:[%s125_s12] sm:$0xff]  ;;  %vm165_vm0 = vcmask 1040384   ;;  %p142_p7 = scmp.lt.s32.totalorder %s375_s9, 1  ;;  %vm169_vm1 = vcmask 0  }
  0x26   : > { %149 = vst [vmem:[#allocation2] sm:$0x1] %v386_v0  ;;  %v152_v2 = vmul.f32 %v150_v1, %v150_v1 }
  0x27   : > { %s510_s9 = smov (!%p142_p7, %s375_s9), 1 }
  0x28   : > { %v153_v3 = vrot.slane %v152_v2, 4  ;;  %s144_s16 = scalar_lea.vmem %s498_s1, %s510_s9 }
  0x2a   : > { %v154_v4 = vadd.f32 %v153_v3, %v152_v2 }
  0x2c   : > { %v155_v5 = vrot.slane %v154_v4, 2 }
  0x2d   : > { %v151_v8 = vld [vmem:[#allocation2] sm:$0x1] }
  0x2e   : > { %v156_v6 = vadd.f32 %v155_v5, %v154_v4 }
  0x30   : > { %v157_v7 = vrot.slane %v156_v6, 1 }
  0x32   : > { %v158_v9 = vadd.f32 %v157_v7, %v156_v6 }
  0x34   : > { %v159_v10 = vadd.f32 %v158_v9, %v151_v8 }
  0x36   : > { %160 = vst [vmem:[#allocation2] sm:$0x1] %v159_v10 }
  0x3d   : > { %v164_v11 = vld [vmem:[#allocation2] sm:$0x1] }
  0x3e   : > { %v166_v12 = vsel %vm165_vm0, %v164_v11, 0.0 }
  0x3f   : > { %167 = vadd.xlane.f32.xlu0 %v166_v12 }
  0xc8   : > { %v168_v13 = vpop.xlane.xlu0 %167 }
  0xc9   : > { %170 = vst.msk [vmem:[%s144_s16] sm:$0x1] %vm169_vm1, %v168_v13 }
  0xca PF: > { %s14_s11 = sadd.s32 1, %s383_s11   ;;  %s502_s6 = smov %s367_s7 }
  0xcb   : > { %p11_p8 = scmp.ge.s32.totalorder %s14_s11, 4   ;;  %s503_s7 = smov %s371_s8 }
  0xcc   : > { %s504_s8 = smov %s446_s18  ;;  %s505_s9 = smov %s379_s10 }
  0xcd   : > { %s506_s10 = smov %s508_s13  ;;  %13 = sbr.rel (!%p11_p8) target bundleno = 4 (0x4), region = 72 }
  0xd2   :  { %188 = vsyncpa [#allocation4], 1 }
  0xd3   :  { %190 = vsyncpa [#allocation4 + $0x1], 1 }

</bundles_post_ra>
